<compile_context>
chip_gen: v7x
topology: tpu7x:2x2x1
jax: 0.10.0
libtpu: 0.0.40
codegen_flags: <defaults>
</compile_context>

<pallas_src>
import functools
import math

import jax
import jax.numpy as jnp
from jax import lax
from jax.experimental import pallas as pl
from jax.experimental.pallas import tpu as pltpu


def _layer_norm_kernel(x_ref, w_ref, b_ref, o_ref, *, eps):
    # x_ref: (TN, D) lane-dense; w_ref / b_ref: (1, D); o_ref: (TN, D)
    x = x_ref[...].astype(jnp.float32)                       # (TN, D)
    mean = jnp.mean(x, axis=-1, keepdims=True)                # (TN, 1)
    xc = x - mean
    var = jnp.mean(xc * xc, axis=-1, keepdims=True)           # biased variance
    inv = lax.rsqrt(var + eps)                                # EUP rsqrt
    y = xc * inv                                              # normalized
    o_ref[...] = (y * w_ref[...] + b_ref[...]).astype(o_ref.dtype)


def _choose_tn(n, d, dtype):
    """Batch-tile size: ~1-2 MiB f32 working set, sublane-aligned, <= padded N."""
    itemsize = jnp.dtype(dtype).itemsize
    sublane = max(8, 32 // itemsize)          # 8 for f32, 16 for bf16, 32 for int8
    # Budget ~2 MiB of f32 per block (the kernel makes an f32 working copy,
    # so budget in f32 bytes regardless of the input dtype).
    target_rows = max(sublane, (2 << 20) // (d * 4))
    tn = (target_rows // sublane) * sublane
    tn = max(sublane, min(tn, 2048))
    # Never exceed the (sublane-padded) batch size for small problems.
    n_min_pad = ((n + sublane - 1) // sublane) * sublane
    return min(tn, n_min_pad)


def layer_norm(x, weight, bias, *, eps=1e-5):
    """x: (N, C, V, L); weight/bias: (C, V, L). Normalize over all non-batch dims."""
    N = x.shape[0]
    D = int(math.prod(x.shape[1:]))

    # Lane-dense 2-D views (pure reshapes, no data movement beyond layout).
    x2 = x.reshape(N, D)
    w2 = weight.reshape(1, D)
    b2 = bias.reshape(1, D)

    TN = _choose_tn(N, D, x.dtype)
    n_blocks = pl.cdiv(N, TN)
    N_pad = n_blocks * TN
    if N_pad != N:
        # Pad with zero rows; they normalize to finite garbage (var=0 -> rsqrt(eps))
        # and are sliced off below. Keeps every block full -> unmasked stores.
        x2 = jnp.pad(x2, ((0, N_pad - N), (0, 0)))

    kernel = functools.partial(_layer_norm_kernel, eps=eps)

    out2 = pl.pallas_call(
        kernel,
        out_shape=jax.ShapeDtypeStruct((N_pad, D), x.dtype),
        grid=(n_blocks,),
        in_specs=[
            pl.BlockSpec((TN, D), lambda i: (i, 0)),   # x: advances with grid step
            pl.BlockSpec((1, D), lambda i: (0, 0)),    # weight: resident across steps
            pl.BlockSpec((1, D), lambda i: (0, 0)),    # bias: resident across steps
        ],
        out_specs=pl.BlockSpec((TN, D), lambda i: (i, 0)),
        compiler_params=pltpu.CompilerParams(
            dimension_semantics=("parallel",)),        # v7x megacore; no-op on v5e/v6e
    )(x2, w2, b2)

    if N_pad != N:
        out2 = out2[:N]
    return out2.reshape(x.shape)


def _reference(x, weight, bias, *, eps=1e-5):
    """Pure-JAX reference reproducing F.layer_norm over input.shape[1:]."""
    axes = tuple(range(1, x.ndim))
    mean = jnp.mean(x, axis=axes, keepdims=True)
    var = jnp.mean((x - mean) ** 2, axis=axes, keepdims=True)
    return (x - mean) / jnp.sqrt(var + eps) * weight[None] + bias[None]


if __name__ == "__main__":
    # Small shapes consistent with the STGNN usage of this module:
    # input (batch=2, channels=4, nodes=16, seq=8); normalized_shape = (4, 16, 8).
    N, C, V, L = 2, 4, 16, 8
    eps = 1e-5

    key = jax.random.PRNGKey(0)
    kx, kw, kb = jax.random.split(key, 3)

    x = jax.random.normal(kx, (N, C, V, L), dtype=jnp.float32)
    # Module initializes weight=1, bias=0; perturb them so the affine path is
    # actually exercised by the self-test.
    weight = 1.0 + 0.1 * jax.random.normal(kw, (C, V, L), dtype=jnp.float32)
    bias = 0.1 * jax.random.normal(kb, (C, V, L), dtype=jnp.float32)

    out = layer_norm(x, weight, bias, eps=eps)
    out = jax.block_until_ready(out)

    ref = _reference(x, weight, bias, eps=eps)
    assert out.shape == x.shape
    assert jnp.allclose(out, ref, atol=1e-5, rtol=1e-5), (
        float(jnp.max(jnp.abs(out - ref))))

    print("KERNEL_OK")
</pallas_src>

<mosaic_0001>
module attributes {stable_mosaic.version = 11 : i64} {
  func.func @_layer_norm_kernel(%arg0: i32, %arg1: memref<8x512xf32, #tpu.memory_space<vmem>>, %arg2: memref<1x512xf32, #tpu.memory_space<vmem>>, %arg3: memref<1x512xf32, #tpu.memory_space<vmem>>, %arg4: memref<8x512xf32, #tpu.memory_space<vmem>>) attributes {dimension_semantics = [#tpu.dimension_semantics<parallel>], iteration_bounds = array<i64: 1>, scalar_prefetch = 0 : i64, scratch_operands = 0 : i64, tpu.core_type = #tpu.core_type<tc>, window_params = [{transform_indices = @transform_0, window_bounds = array<i64: 8, 512>}, {pipeline_mode = #tpu.pipeline_mode<synchronous>, transform_indices = @transform_1, window_bounds = array<i64: 1, 512>}, {pipeline_mode = #tpu.pipeline_mode<synchronous>, transform_indices = @transform_2, window_bounds = array<i64: 1, 512>}, {transform_indices = @transform_3, window_bounds = array<i64: 8, 512>}]} {
    %c0 = arith.constant 0 : index
    %c0_0 = arith.constant 0 : index
    %0 = vector.load %arg1[%c0, %c0_0] : memref<8x512xf32, #tpu.memory_space<vmem>>, vector<8x512xf32>
    %cst = arith.constant dense<0.000000e+00> : vector<8xf32>
    %1 = vector.multi_reduction <add>, %0, %cst [1] : vector<8x512xf32> to vector<8xf32>
    %2 = vector.shape_cast %1 : vector<8xf32> to vector<8x1xf32>
    %cst_1 = arith.constant 5.120000e+02 : f32
    %3 = vector.broadcast %cst_1 : f32 to vector<8x1xf32>
    %4 = arith.divf %2, %3 : vector<8x1xf32>
    %5 = vector.broadcast %4 : vector<8x1xf32> to vector<8x512xf32>
    %6 = arith.subf %0, %5 : vector<8x512xf32>
    %7 = arith.mulf %6, %6 : vector<8x512xf32>
    %cst_2 = arith.constant dense<0.000000e+00> : vector<8xf32>
    %8 = vector.multi_reduction <add>, %7, %cst_2 [1] : vector<8x512xf32> to vector<8xf32>
    %9 = vector.shape_cast %8 : vector<8xf32> to vector<8x1xf32>
    %cst_3 = arith.constant 5.120000e+02 : f32
    %10 = vector.broadcast %cst_3 : f32 to vector<8x1xf32>
    %11 = arith.divf %9, %10 : vector<8x1xf32>
    %cst_4 = arith.constant 9.99999974E-6 : f32
    %12 = vector.broadcast %cst_4 : f32 to vector<8x1xf32>
    %13 = arith.addf %11, %12 : vector<8x1xf32>
    %14 = math.rsqrt %13 : vector<8x1xf32>
    %15 = vector.broadcast %14 : vector<8x1xf32> to vector<8x512xf32>
    %16 = arith.mulf %6, %15 : vector<8x512xf32>
    %c0_5 = arith.constant 0 : index
    %c0_6 = arith.constant 0 : index
    %17 = vector.load %arg2[%c0_5, %c0_6] : memref<1x512xf32, #tpu.memory_space<vmem>>, vector<1x512xf32>
    %18 = vector.broadcast %17 : vector<1x512xf32> to vector<8x512xf32>
    %19 = arith.mulf %16, %18 : vector<8x512xf32>
    %c0_7 = arith.constant 0 : index
    %c0_8 = arith.constant 0 : index
    %20 = vector.load %arg3[%c0_7, %c0_8] : memref<1x512xf32, #tpu.memory_space<vmem>>, vector<1x512xf32>
    %21 = vector.broadcast %20 : vector<1x512xf32> to vector<8x512xf32>
    %22 = arith.addf %19, %21 : vector<8x512xf32>
    %c0_9 = arith.constant 0 : index
    %c0_10 = arith.constant 0 : index
    %23 = vector.load %arg4[%c0_9, %c0_10] : memref<8x512xf32, #tpu.memory_space<vmem>>, vector<8x512xf32>
    tpu.vector_store %arg4[%c0_9, %c0_10], %22 {strides = array<i32>} : memref<8x512xf32, #tpu.memory_space<vmem>>, vector<8x512xf32>,
    return
  }
  func.func @transform_0(%arg0: i32) -> (i32, i32) {
    %c0_i32 = arith.constant 0 : i32
    %c0_i32_0 = arith.constant 0 : i32
    return %arg0, %c0_i32 : i32, i32
  }
  func.func @transform_1(%arg0: i32) -> (i32, i32) {
    %c0_i32 = arith.constant 0 : i32
    %c0_i32_0 = arith.constant 0 : i32
    %c0_i32_1 = arith.constant 0 : i32
    return %c0_i32, %c0_i32_0 : i32, i32
  }
  func.func @transform_2(%arg0: i32) -> (i32, i32) {
    %c0_i32 = arith.constant 0 : i32
    %c0_i32_0 = arith.constant 0 : i32
    %c0_i32_1 = arith.constant 0 : i32
    return %c0_i32, %c0_i32_0 : i32, i32
  }
  func.func @transform_3(%arg0: i32) -> (i32, i32) {
    %c0_i32 = arith.constant 0 : i32
    %c0_i32_0 = arith.constant 0 : i32
    return %arg0, %c0_i32 : i32, i32
  }
}

</mosaic_0001>

<bundles_post_ra>
// kernel: tpu_custom_call.1
= control target key start
LH: loop header
LB: loop body
LE: loop exit
PB: predicated region body
PF: predicated region fallthrough
CT: control target
= control target key end

     0   :  { %8 = vsyncpa [#allocation3], 0  ;;  %s281_s0 = inlined_call_operand.hbm [shape: f32[8,512], index: 0, kind: input, shape index: {}]   ;;  %s282_s1 = inlined_call_operand.hbm [shape: f32[1,512], index: 1, kind: input, shape index: {}]   ;;  %s283_s2 = inlined_call_operand.vmem [shape: f32[1,512], index: 2, kind: input, shape index: {}]   ;;  %s284_s3 = inlined_call_operand.hbm [shape: f32[8,512], index: 3, kind: output, shape index: {}]  }
   0x1   :  { %9 = vsyncpa [#allocation6], 0 }
   0x2   :  { %10 = vsyncpa [#allocation4], 0  ;;  %s219_s12 = smov [#allocation2]   ;;  %s220_s14 = smov [#allocation5]  }
   0x3   :  { %s17_s13 = sshll.u32 %s219_s12, 4  ;;  %s27_s15 = sshll.u32 %s220_s14, 4  ;;  %s18_s13 = int_to_ptr.vmem [resolvable:$true] %s17_s13  ;;  %s28_s15 = int_to_ptr.vmem [resolvable:$true] %s27_s15 }
   0x4   :  { %s147_s18 = scalar_lea.hbm %s281_s0, 512 }
   0x5   :  { %p148_p0 = scmp.ne.s32.totalorder %s281_s0, %s147_s18  ;;  %p151_p1 = scmp.lt.u32.totalorder %s147_s18, %s281_s0 }
   0x7   :  { %p153_p2 = pnand %p151_p1, %p148_p0 }
   0x9   :  { %156 = shalt.err (!%p153_p2)
}
   0xa   :  { %s157_s23 = scalar_lea.vmem %s18_s13, 512  ;;  %p162_p4 = scmp.lt.s32.totalorder %s18_s13, %s18_s13 }
   0xb   :  { %p158_p3 = scmp.ne.s32.totalorder %s18_s13, %s157_s23  ;;  %p163_p5 = scmp.lt.s32.totalorder %s157_s23, %s157_s23 }
   0xd   :  { %p164_p6 = por %p163_p5, %p162_p4 }
   0xf   :  { %p165_p7 = pnand %p164_p6, %p158_p3 }
  0x11   :  { %168 = shalt.err (!%p165_p7)
}
  0x12   :  { %20 = dma.hbm_to_vmem [thread:$0]  %s281_s0, 512, %s18_s13, [#allocation3]  }
  0x13   :  { %s169_s28 = scalar_lea.hbm %s282_s1, 64 }
  0x14   :  { %p170_p8 = scmp.ne.s32.totalorder %s282_s1, %s169_s28  ;;  %p173_p9 = scmp.lt.u32.totalorder %s169_s28, %s282_s1 }
  0x16   :  { %p175_p10 = pnand %p173_p9, %p170_p8 }
  0x18   :  { %178 = shalt.err (!%p175_p10)
}
  0x19   :  { %s179_s6 = scalar_lea.vmem %s28_s15, 64  ;;  %p184_p12 = scmp.lt.s32.totalorder %s28_s15, %s28_s15 }
  0x1a   :  { %p180_p11 = scmp.ne.s32.totalorder %s28_s15, %s179_s6  ;;  %p185_p13 = scmp.lt.s32.totalorder %s179_s6, %s179_s6 }
  0x1c   :  { %p186_p0 = por %p185_p13, %p184_p12 }
  0x1e   :  { %p187_p1 = pnand %p186_p0, %p180_p11 }
  0x20   :  { %190 = shalt.err (!%p187_p1)
}
  0x21   :  { %30 = dma.hbm_to_vmem [thread:$0]  %s282_s1, 64, %s28_s15, [#allocation6]  }
  0x22   :  { %213 = dma.done.wait [#allocation3], 512  }
  0x23   :  { %214 = vsyncadd [#allocation3], 4294966784 }
  0x24   :  { %215 = dma.done.wait [#allocation6], 64  }
  0x25   :  { %216 = vsyncadd [#allocation6], 4294967232  ;;  %v39_v0 = vld [vmem:[#allocation2] sm:$0xff]  ;;  %v40_v1 = vld [vmem:[#allocation2 + $0x8] sm:$0xff]  ;;  %v72_v22 = vlaneseq  ;;  %s221_s9 = smov [#allocation7]  }
  0x26   :  { %v41_v2 = vld [vmem:[#allocation2 + $0x10] sm:$0xff]  ;;  %v43_v3 = vadd.f32 %v40_v1, %v39_v0  ;;  %v42_v4 = vld [vmem:[#allocation2 + $0x18] sm:$0xff]  ;;  %v70_v29 = vld [vmem:[#allocation5] sm:$0xf]  ;;  %s132_s10 = sshll.u32 %s221_s9, 4  ;;  %s133_s10 = int_to_ptr.vmem [resolvable:$true] %s132_s10 }
  0x27   :  { %v73_v24 = vshrl.u32 %v72_v22, 7  ;;  %v96_v30 = vld [vmem:[%s283_s2] sm:$0xf]  ;;  %s191_s2 = scalar_lea.vmem %s133_s10, 512  ;;  %p196_p3 = scmp.lt.s32.totalorder %s133_s10, %s133_s10 }
  0x28   :  { %v44_v5 = vadd.f32 %v43_v3, %v41_v2  ;;  %p192_p2 = scmp.ne.s32.totalorder %s133_s10, %s191_s2  ;;  %p197_p4 = scmp.lt.s32.totalorder %s191_s2, %s191_s2 }
  0x29   :  { %v74_v25 = vsub.s32 0, %v73_v24  ;;  %v78_v26 = vsub.s32 1, %v73_v24  ;;  %v82_v27 = vsub.s32 2, %v73_v24  ;;  %v86_v28 = vsub.s32 3, %v73_v24 }
  0x2a   :  { %v45_v6 = vadd.f32 %v44_v5, %v42_v4  ;;  %p198_p5 = por %p197_p4, %p196_p3 }
  0x2b   :  { %v75_v31 = vrot.slane %v70_v29, %v74_v25  ;;  %v79_v32 = vrot.slane %v70_v29, %v78_v26  ;;  %v83_v33 = vrot.slane %v70_v29, %v82_v27  ;;  %v87_v34 = vrot.slane %v70_v29, %v86_v28 }
  0x2c   :  { %46 = vadd.xlane.f32.xlu0 %v45_v6  ;;  %v101_v36 = vrot.slane %v96_v30, %v74_v25  ;;  %v105_v37 = vrot.slane %v96_v30, %v78_v26  ;;  %v109_v38 = vrot.slane %v96_v30, %v82_v27  ;;  %v113_v39 = vrot.slane %v96_v30, %v86_v28  ;;  %p199_p6 = pnand %p198_p5, %p192_p2 }
  0xb9   :  { %v47_v7 = vpop.xlane.xlu0 %46 }
  0xba   :  { %v49_v8 = vmul.f32 0.001953125, %v47_v7 }
  0xbc   :  { %v50_v9 = vsub.f32 %v39_v0, %v49_v8  ;;  %v51_v10 = vsub.f32 %v40_v1, %v49_v8  ;;  %v52_v11 = vsub.f32 %v41_v2, %v49_v8  ;;  %v53_v12 = vsub.f32 %v42_v4, %v49_v8 }
  0xbe   :  { %v54_v13 = vmul.f32 %v50_v9, %v50_v9  ;;  %v55_v14 = vmul.f32 %v51_v10, %v51_v10  ;;  %v56_v15 = vmul.f32 %v52_v11, %v52_v11  ;;  %v57_v17 = vmul.f32 %v53_v12, %v53_v12 }
  0xc0   :  { %v58_v16 = vadd.f32 %v55_v14, %v54_v13 }
  0xc2   :  { %v59_v18 = vadd.f32 %v58_v16, %v56_v15 }
  0xc4   :  { %v60_v19 = vadd.f32 %v59_v18, %v57_v17 }
  0xc6   :  { %61 = vadd.xlane.f32.xlu0 %v60_v19 }
 0x153   :  { %v62_v20 = vpop.xlane.xlu0 %61 }
 0x154   :  { %v63_v21 = vmul.f32 0.001953125, %v62_v20 }
 0x156   :  { %v64_v23 = vadd.f32 1e-05, %v63_v21 }
 0x158   :  { %145 = vrsqrt.f32 %v64_v23 }
 0x162   :  { %v146_v35 = vpop.eup %145 }
 0x163   :  { %v66_v40 = vmul.f32 %v146_v35, %v50_v9  ;;  %v67_v41 = vmul.f32 %v146_v35, %v51_v10  ;;  %v68_v42 = vmul.f32 %v146_v35, %v52_v11  ;;  %v69_v43 = vmul.f32 %v146_v35, %v53_v12 }
 0x165   :  { %v92_v44 = vmul.f32 %v75_v31, %v66_v40  ;;  %v93_v45 = vmul.f32 %v79_v32, %v67_v41  ;;  %v94_v46 = vmul.f32 %v83_v33, %v68_v42  ;;  %v95_v47 = vmul.f32 %v87_v34, %v69_v43 }
 0x167   :  { %v118_v48 = vadd.f32 %v101_v36, %v92_v44  ;;  %v119_v49 = vadd.f32 %v105_v37, %v93_v45  ;;  %v120_v50 = vadd.f32 %v109_v38, %v94_v46  ;;  %v121_v51 = vadd.f32 %v113_v39, %v95_v47 }
 0x169   :  { %122 = vst [vmem:[#allocation7] sm:$0xff] %v118_v48  ;;  %123 = vst [vmem:[#allocation7 + $0x8] sm:$0xff] %v119_v49 }
 0x16a   :  { %124 = vst [vmem:[#allocation7 + $0x10] sm:$0xff] %v120_v50  ;;  %125 = vst [vmem:[#allocation7 + $0x18] sm:$0xff] %v121_v51 }
 0x16b   :  { %202 = shalt.err (!%p199_p6)
}
 0x16c   :  { %s203_s13 = scalar_lea.hbm %s284_s3, 512 }
 0x16d   :  { %p204_p7 = scmp.ne.s32.totalorder %s284_s3, %s203_s13  ;;  %p207_p8 = scmp.lt.u32.totalorder %s203_s13, %s284_s3 }
 0x16f   :  { %p209_p9 = pnand %p207_p8, %p204_p7 }
 0x171   :  { %212 = shalt.err (!%p209_p9)
}
 0x172   :  { %135 = dma.vmem_to_hbm [thread:$0]  %s133_s10, 512, %s284_s3, [#allocation4]  }
 0x173   :  { %217 = dma.done.wait [#allocation4], 512  }
 0x174   :  { %218 = vsyncadd [#allocation4], 4294966784 }
 0x175   :  { %139 = vsyncpa [#allocation3], 1 }
 0x176   :  { %140 = vsyncpa [#allocation6], 1 }
 0x177   :  { %141 = vsyncpa [#allocation4], 1 }

</bundles_post_ra>
